<compile_context>
chip_gen: v7x
topology: tpu7x:2x2x1
jax: 0.10.0
libtpu: 0.0.40
codegen_flags: <defaults>
</compile_context>

<pallas_src>
import functools
import numpy as np
import jax
import jax.numpy as jnp
from jax.experimental import pallas as pl
from jax.experimental.pallas import tpu as pltpu

# ---------------- problem sizes (small, consistent with the module) -----------
HIDDEN = 32            # args.node_hidden_dim
NODE_COUNTS = (6, 8)   # two graphs -> N_total = 14 nodes
N_TOTAL = sum(NODE_COUNTS)
N_PAD = 16             # sublane-aligned node count (zero-padded rows, discarded)


# ============================ Pallas kernel ===================================
def gcn_layer_kernel(x_ref, a_ref, w_ref, b_ref, out_ref):
    """Fused GCNConv + bias + ReLU over the whole (padded) node set.

    x_ref  : (N_PAD, H)      node features (zero rows for padding)
    a_ref  : (N_PAD, N_PAD)  dense A + I, indexed [dst, src]; padded rows have
                             only their self loop (deg = 1), so rsqrt is safe
                             and padded outputs never touch real rows.
    w_ref  : (H, H)          GCN linear weight stored [in, out] (= torch weight.T)
    b_ref  : (1, H)          GCN bias
    out_ref: (N_PAD, H)
    """
    a = a_ref[...]
    # symmetric degree normalization D^{-1/2}, computed in-kernel (EUP rsqrt)
    deg = jnp.sum(a, axis=-1, keepdims=True)                        # [N_PAD, 1]
    dinv = jax.lax.rsqrt(deg)

    # X @ W  — MXU push #1
    xw = jnp.dot(x_ref[...], w_ref[...], preferred_element_type=jnp.float32)
    # D^{-1/2} (A+I) D^{-1/2} X W  — MXU push #2 (scale sources before, dests after;
    # avoids building a normalized A, which would need a dinv transpose via the XLU)
    agg = jnp.dot(a, xw * dinv, preferred_element_type=jnp.float32)
    h = agg * dinv + b_ref[...]

    # act = ReLU (args.GNNact == 'relu').
    # Dropout(p=args.GNNdrop) is identity in eval mode.
    # TODO(synk): training-mode dropout (stateful PRNG mask) not implemented.
    out_ref[...] = jnp.maximum(h, 0.0)


# ============================ jitted pallas launch ============================
@functools.partial(jax.jit, static_argnames=())
def _gcn_layer_call(x_pad, a_hat, w, b):
    vmem = pl.BlockSpec(memory_space=pltpu.MemorySpace.VMEM)
    return pl.pallas_call(
        gcn_layer_kernel,
        out_shape=jax.ShapeDtypeStruct((N_PAD, HIDDEN), jnp.float32),
        in_specs=[vmem, vmem, vmem, vmem],
        out_specs=vmem,
    )(x_pad, a_hat, w, b)


# ============================ wrapper =========================================
def gnn_layer_forward(x, edge_index_np, params):
    """GNNLayer.forward(x, edge_index, edge_attr, batch, y) -> ReLU(GCNConv(x, edge_index)).

    edge_attr / batch / y are unused by the reference forward.  The sparse
    message passing is realized as a dense normalized-adjacency matmul; the
    (tiny, static) dense A + I is built host-side from edge_index (glue).
    """
    n, h = x.shape

    # dense A + I over the padded node count, [dst, src] layout (PyG source->target flow)
    a_hat = np.zeros((N_PAD, N_PAD), np.float32)
    np.add.at(a_hat, (edge_index_np[1], edge_index_np[0]), 1.0)
    a_hat += np.eye(N_PAD, dtype=np.float32)        # self loops (padded rows too)

    x_pad = jnp.zeros((N_PAD, h), jnp.float32).at[:n].set(x)

    out_pad = _gcn_layer_call(x_pad, jnp.asarray(a_hat), params["w"], params["b"])
    return out_pad[:n]


# ============================ reference (pure NumPy, PyG GCNConv) =============
def reference(x, edge_index, w, b):
    x = np.asarray(x, np.float32)
    w = np.asarray(w, np.float32)
    b = np.asarray(b, np.float32)
    n = x.shape[0]
    # gcn_norm: add self loops, deg by target, symmetric normalization
    src = np.concatenate([edge_index[0], np.arange(n)])
    dst = np.concatenate([edge_index[1], np.arange(n)])
    deg = np.bincount(dst, minlength=n).astype(np.float32)
    dinv = 1.0 / np.sqrt(deg)
    norm = dinv[src] * dinv[dst]
    xw = x @ w                                   # lin (no bias) ; w already [in,out]
    out = np.zeros_like(xw)
    np.add.at(out, dst, norm[:, None] * xw[src]) # propagate
    return np.maximum(out + b, 0.0)              # + bias, ReLU (dropout eval = id)


# ============================ main ============================================
if __name__ == "__main__":
    key = jax.random.PRNGKey(0)
    kx, kw, kb = jax.random.split(key, 3)

    params = {
        # stored as [in, out] (PyTorch GCNConv lin.weight transposed) + bias [1, out]
        "w": jax.random.normal(kw, (HIDDEN, HIDDEN), jnp.float32) * 0.1,
        "b": jax.random.normal(kb, (1, HIDDEN), jnp.float32) * 0.1,
    }

    # node features for two disjoint graphs (6 + 8 nodes)
    x = jax.random.normal(kx, (N_TOTAL, HIDDEN), jnp.float32)

    # deterministic edge set: ring per graph + two chords in graph 1, undirected
    und = [(0, 1), (1, 2), (2, 3), (3, 4), (4, 5), (5, 0),
           (6, 7), (7, 8), (8, 9), (9, 10), (10, 11), (11, 12), (12, 13), (13, 6),
           (6, 9), (8, 12)]
    u = np.array([e[0] for e in und], np.int32)
    v = np.array([e[1] for e in und], np.int32)
    edge_index = np.stack([np.concatenate([u, v]),
                           np.concatenate([v, u])]).astype(np.int32)   # [2, 32]

    out = gnn_layer_forward(x, edge_index, params)
    out = jax.block_until_ready(out)

    ref = reference(x, edge_index, params["w"], params["b"])
    np.testing.assert_allclose(np.asarray(out), ref, rtol=1e-3, atol=1e-3)

    print("KERNEL_OK")
</pallas_src>

<mosaic_0001>
module attributes {stable_mosaic.version = 11 : i64} {
  func.func @gcn_layer_kernel(%arg0: memref<16x32xf32, #tpu.memory_space<vmem>>, %arg1: memref<16x16xf32, #tpu.memory_space<vmem>>, %arg2: memref<32x32xf32, #tpu.memory_space<vmem>>, %arg3: memref<1x32xf32, #tpu.memory_space<vmem>>, %arg4: memref<16x32xf32, #tpu.memory_space<vmem>>) attributes {dimension_semantics = [], scalar_prefetch = 0 : i64, scratch_operands = 0 : i64, tpu.core_type = #tpu.core_type<tc>} {
    %c0 = arith.constant 0 : index
    %c0_0 = arith.constant 0 : index
    %0 = vector.load %arg1[%c0, %c0_0] : memref<16x16xf32, #tpu.memory_space<vmem>>, vector<16x16xf32>
    %cst = arith.constant dense<0.000000e+00> : vector<16xf32>
    %1 = vector.multi_reduction <add>, %0, %cst [1] : vector<16x16xf32> to vector<16xf32>
    %2 = vector.shape_cast %1 : vector<16xf32> to vector<16x1xf32>
    %3 = math.rsqrt %2 : vector<16x1xf32>
    %c0_1 = arith.constant 0 : index
    %c0_2 = arith.constant 0 : index
    %4 = vector.load %arg0[%c0_1, %c0_2] : memref<16x32xf32, #tpu.memory_space<vmem>>, vector<16x32xf32>
    %c0_3 = arith.constant 0 : index
    %c0_4 = arith.constant 0 : index
    %5 = vector.load %arg2[%c0_3, %c0_4] : memref<32x32xf32, #tpu.memory_space<vmem>>, vector<32x32xf32>
    %cst_5 = arith.constant dense<0.000000e+00> : vector<16x32xf32>
    %6 = tpu.matmul %4, %5, %cst_5 {dimension_numbers = #tpu.dot_dimension_numbers<[1], [0], [0], [1], [0, 0, 1, 1], [], []>} : vector<16x32xf32>, vector<32x32xf32>, vector<16x32xf32> -> vector<16x32xf32>
    %7 = vector.broadcast %3 : vector<16x1xf32> to vector<16x32xf32>
    %8 = arith.mulf %6, %7 : vector<16x32xf32>
    %cst_6 = arith.constant dense<0.000000e+00> : vector<16x32xf32>
    %9 = tpu.matmul %0, %8, %cst_6 {dimension_numbers = #tpu.dot_dimension_numbers<[1], [0], [0], [1], [0, 0, 1, 1], [], []>} : vector<16x16xf32>, vector<16x32xf32>, vector<16x32xf32> -> vector<16x32xf32>
    %10 = vector.broadcast %3 : vector<16x1xf32> to vector<16x32xf32>
    %11 = arith.mulf %9, %10 : vector<16x32xf32>
    %c0_7 = arith.constant 0 : index
    %c0_8 = arith.constant 0 : index
    %12 = vector.load %arg3[%c0_7, %c0_8] : memref<1x32xf32, #tpu.memory_space<vmem>>, vector<1x32xf32>
    %13 = vector.broadcast %12 : vector<1x32xf32> to vector<16x32xf32>
    %14 = arith.addf %11, %13 : vector<16x32xf32>
    %cst_9 = arith.constant 0.000000e+00 : f32
    %15 = vector.broadcast %cst_9 : f32 to vector<16x32xf32>
    %16 = arith.maximumf %14, %15 : vector<16x32xf32>
    %c0_10 = arith.constant 0 : index
    %c0_11 = arith.constant 0 : index
    %17 = vector.load %arg4[%c0_10, %c0_11] : memref<16x32xf32, #tpu.memory_space<vmem>>, vector<16x32xf32>
    tpu.vector_store %arg4[%c0_10, %c0_11], %16 {strides = array<i32>} : memref<16x32xf32, #tpu.memory_space<vmem>>, vector<16x32xf32>,
    return
  }
}

</mosaic_0001>

<bundles_post_ra>
// kernel: _gcn_layer_call.1
= control target key start
LH: loop header
LB: loop body
LE: loop exit
PB: predicated region body
PF: predicated region fallthrough
CT: control target
= control target key end

     0   :  { %9 = vsyncpa [#allocation3], 0  ;;  %s532_s0 = inlined_call_operand.hbm [shape: f32[16,32], index: 0, kind: input, shape index: {}]   ;;  %s533_s1 = inlined_call_operand.hbm [shape: f32[16,16], index: 1, kind: input, shape index: {}]   ;;  %s534_s2 = inlined_call_operand.hbm [shape: f32[32,32], index: 2, kind: input, shape index: {}]   ;;  %s535_s3 = inlined_call_operand.vmem [shape: f32[1,32], index: 3, kind: input, shape index: {}]   ;;  %s536_s4 = inlined_call_operand.hbm [shape: f32[16,32], index: 4, kind: output, shape index: {}]  }
   0x1   :  { %10 = vsyncpa [#allocation6], 0 }
   0x2   :  { %11 = vsyncpa [#allocation4], 0  ;;  %s423_s15 = smov [#allocation5]   ;;  %s424_s17 = smov [#allocation2]  }
   0x3   :  { %s29_s16 = sshll.u32 %s423_s15, 4  ;;  %s17_s18 = sshll.u32 %s424_s17, 4  ;;  %s30_s16 = int_to_ptr.vmem [resolvable:$true] %s29_s16  ;;  %s454_s18 = int_to_ptr.vmem [resolvable:$true] %s17_s18 }
   0x4   :  { %s329_s21 = scalar_lea.hbm %s533_s1, 256 }
   0x5   :  { %p330_p0 = scmp.ne.s32.totalorder %s533_s1, %s329_s21  ;;  %p333_p1 = scmp.lt.u32.totalorder %s329_s21, %s533_s1 }
   0x7   :  { %p335_p2 = pnand %p333_p1, %p330_p0 }
   0x9   :  { %338 = shalt.err (!%p335_p2)
}
   0xa   :  { %s339_s26 = scalar_lea.vmem %s30_s16, 256  ;;  %p344_p4 = scmp.lt.s32.totalorder %s30_s16, %s30_s16 }
   0xb   :  { %p340_p3 = scmp.ne.s32.totalorder %s30_s16, %s339_s26  ;;  %p345_p5 = scmp.lt.s32.totalorder %s339_s26, %s339_s26 }
   0xd   :  { %p346_p6 = por %p345_p5, %p344_p4 }
   0xf   :  { %p347_p7 = pnand %p346_p6, %p340_p3 }
  0x11   :  { %350 = shalt.err (!%p347_p7)
}
  0x12   :  { %s425_s27 = smov 128   ;;  %s426_s28 = smov 8  }
  0x13   :  { %35 = dma.hbm_to_vmem [thread:$0]  %s533_s1, 256, %s30_s16, [#allocation6], %s425_s27, %s425_s27, %s426_s28  }
  0x14   :  { %s351_s7 = scalar_lea.hbm %s532_s0, 256 }
  0x15   :  { %p352_p8 = scmp.ne.s32.totalorder %s532_s0, %s351_s7  ;;  %p355_p9 = scmp.lt.u32.totalorder %s351_s7, %s532_s0 }
  0x17   :  { %p357_p10 = pnand %p355_p9, %p352_p8 }
  0x19   :  { %360 = shalt.err (!%p357_p10)
}
  0x1a   :  { %s361_s12 = scalar_lea.vmem %s454_s18, 256  ;;  %p366_p12 = scmp.lt.s32.totalorder %s454_s18, %s454_s18 }
  0x1b   :  { %p362_p11 = scmp.ne.s32.totalorder %s454_s18, %s361_s12  ;;  %p367_p13 = scmp.lt.s32.totalorder %s361_s12, %s361_s12 }
  0x1d   :  { %p368_p0 = por %p367_p13, %p366_p12 }
  0x1f   :  { %p369_p1 = pnand %p368_p0, %p362_p11 }
  0x21   :  { %372 = shalt.err (!%p369_p1)
}
  0x22   :  { %23 = dma.hbm_to_vmem [thread:$0]  %s532_s0, 256, %s454_s18, [#allocation3], %s425_s27, %s425_s27, %s426_s28  }
  0x23   :  { %s427_s14 = smov [#allocation7]   ;;  %s373_s19 = scalar_lea.hbm %s534_s2, 512 }
  0x24   :  { %s41_s15 = sshll.u32 %s427_s14, 4  ;;  %p374_p2 = scmp.ne.s32.totalorder %s534_s2, %s373_s19  ;;  %s42_s15 = int_to_ptr.vmem [resolvable:$true] %s41_s15 }
  0x25   :  { %p377_p3 = scmp.lt.u32.totalorder %s373_s19, %s534_s2 }
  0x27   :  { %p379_p4 = pnand %p377_p3, %p374_p2 }
  0x29   :  { %382 = shalt.err (!%p379_p4)
}
  0x2a   :  { %s383_s24 = scalar_lea.vmem %s42_s15, 512  ;;  %p388_p6 = scmp.lt.s32.totalorder %s42_s15, %s42_s15 }
  0x2b   :  { %p384_p5 = scmp.ne.s32.totalorder %s42_s15, %s383_s24  ;;  %p389_p7 = scmp.lt.s32.totalorder %s383_s24, %s383_s24 }
  0x2d   :  { %p390_p8 = por %p389_p7, %p388_p6 }
  0x2f   :  { %p391_p9 = pnand %p390_p8, %p384_p5 }
  0x31   :  { %394 = shalt.err (!%p391_p9)
}
  0x32   :  { %47 = dma.hbm_to_vmem [thread:$0]  %s534_s2, 512, %s42_s15, [#allocation6], %s425_s27, %s425_s27, %s426_s28  }
  0x33   :  { %417 = dma.done.wait [#allocation3], 256  }
  0x34   :  { %418 = vsyncadd [#allocation3], 4294967040 }
  0x35   :  { %419 = dma.done.wait [#allocation6], 768  }
  0x36   :  { %420 = vsyncadd [#allocation6], 4294966528  ;;  %vm76_vm0 = vcmask 261120   ;;  %v72_v0 = vld [vmem:[#allocation7] sm:$0xff]  ;;  %v73_v1 = vld [vmem:[#allocation7 + $0x8] sm:$0xff]  ;;  %vm61_vm1 = vcmask 130048  }
  0x37   :  { %v74_v2 = vld [vmem:[#allocation7 + $0x10] sm:$0xff]  ;;  %v307_v3 = vpack.c.bf16 %v73_v1, %v72_v0  ;;  %v75_v4 = vld [vmem:[#allocation7 + $0x18] sm:$0xff]  ;;  %v70_v5 = vld [vmem:[#allocation2] sm:$0xff]  ;;  %s428_s26 = smov [#allocation8]  }
  0x38   :  { %v311_v6 = vpack.c.bf16 %v75_v4, %v74_v2  ;;  %297 = vmatprep.mubr.msk.f32.mxu0 %vm76_vm0, %v70_v5  ;;  %v59_v7 = vld [vmem:[#allocation5] sm:$0xff]  ;;  %v60_v8 = vld [vmem:[#allocation5 + $0x8] sm:$0xff]  ;;  %v71_v11 = vld [vmem:[#allocation2 + $0x8] sm:$0xff]  ;;  %s261_s29 = sshll.u32 %s428_s26, 4  ;;  %s262_s29 = int_to_ptr.vmem [resolvable:$true] %s261_s29 }
  0x39   :  { %308 = vmatprep.subr.bf16.mxu0 %v307_v3  ;;  %v62_v9 = vsel %vm61_vm1, %v59_v7, 0.0  ;;  %304 = vmatprep.mubr.msk.f32.mxu1 %vm61_vm1, %v59_v7  ;;  %v65_v10 = vsel %vm61_vm1, %v60_v8, 0.0  ;;  %v278_v22 = vld [vmem:[%s535_s3] ss:$0 sm:$0xff]  ;;  %s395_s30 = scalar_lea.vmem %s262_s29, 256  ;;  %p400_p11 = scmp.lt.s32.totalorder %s262_s29, %s262_s29 }
  0x3a   :  { %310 = vmatpush3.bf16.msra.mxu0 %v307_v3  ;;  %63 = vadd.xlane.f32.xlu0 %v62_v9  ;;  %p396_p10 = scmp.ne.s32.totalorder %s262_s29, %s395_s30  ;;  %p401_p12 = scmp.lt.s32.totalorder %s395_s30, %s395_s30 }
  0x3b   :  { %312 = vmatprep.subr.bf16.mxu0 %v311_v6 }
  0x3c   :  { %p402_p13 = por %p401_p12, %p400_p11 }
  0x3e   :  { %314 = vmatpush3.bf16.msra.mxu0 %v311_v6  ;;  %66 = vadd.xlane.f32.xlu0 %v65_v10  ;;  %p403_p0 = pnand %p402_p13, %p396_p10 }
  0x41   :  { %298 = vmatmul.mubr.msk.f32.vlgmr.msra.gmra.mrb[0].mxu0 %vm76_vm0, %v71_v11 }
  0xc7   :  { %v64_v12 = vpop.xlane.xlu0 %63 }
  0xcb   :  { %v67_v13 = vpop.xlane.xlu0 %66 }
  0xcc   :  { %325 = vrsqrt.f32 %v67_v13 }
  0xcd   :  { %327 = vrsqrt.f32 %v64_v12 }
  0xd6   :  { %v326_v14 = vpop.eup %325 }
  0xd7   :  { %v328_v16 = vpop.eup %327 }
 0x114   :  { %v299_v15 = vpop.f32.mrb[0].mxu0 }
 0x115   :  { %v159_v17 = vmul.f32 %v326_v14, %v299_v15  ;;  %v149_v18 = vpop.f32.mrb[1].mxu0 }
 0x116   :  { %v158_v19 = vmul.f32 %v328_v16, %v149_v18 }
 0x118   :  { %v315_v20 = vpack.c.bf16 %v159_v17, %v158_v19 }
 0x11a   :  { %316 = vmatprep.subr.bf16.mxu1 %v315_v20 }
 0x11b   :  { %318 = vmatpush3.bf16.msra.mxu1 %v315_v20 }
 0x11e   :  { %305 = vmatmul.mubr.msk.f32.vlgmr.msra.gmra.mrb[0].mxu1 %vm61_vm1, %v60_v8 }
 0x1f1   :  { %v306_v21 = vpop.f32.mrb[0].mxu1 }
 0x1f2   :  { %v242_v23 = vmul.f32 %v326_v14, %v306_v21  ;;  %v232_v24 = vpop.f32.mrb[1].mxu1 }
 0x1f3   :  { %v241_v25 = vmul.f32 %v328_v16, %v232_v24 }
 0x1f4   :  { %v251_v26 = vadd.f32 %v278_v22, %v242_v23 }
 0x1f5   :  { %v250_v27 = vadd.f32 %v278_v22, %v241_v25 }
 0x1f6   :  { %v253_v28 = vmax.f32 %v251_v26, 0.0 }
 0x1f7   :  { %v252_v29 = vmax.f32 %v250_v27, 0.0 }
 0x1f8   :  { %255 = vst.msk [vmem:[#allocation8 + $0x8] sm:$0xff] %vm76_vm0, %v253_v28 }
 0x1f9   :  { %254 = vst.msk [vmem:[#allocation8] sm:$0xff] %vm76_vm0, %v252_v29 }
 0x1fa   :  { %406 = shalt.err (!%p403_p0)
}
 0x1fb   :  { %s407_s6 = scalar_lea.hbm %s536_s4, 256 }
 0x1fc   :  { %p408_p1 = scmp.ne.s32.totalorder %s536_s4, %s407_s6  ;;  %p411_p2 = scmp.lt.u32.totalorder %s407_s6, %s536_s4 }
 0x1fe   :  { %p413_p3 = pnand %p411_p2, %p408_p1 }
 0x200   :  { %416 = shalt.err (!%p413_p3)
}
 0x201   :  { %267 = dma.vmem_to_hbm [thread:$0]  %s262_s29, 256, %s536_s4, [#allocation4], %s425_s27, %s425_s27, %s426_s28  }
 0x202   :  { %421 = dma.done.wait [#allocation4], 256  }
 0x203   :  { %422 = vsyncadd [#allocation4], 4294967040 }
 0x204   :  { %271 = vsyncpa [#allocation3], 1 }
 0x205   :  { %272 = vsyncpa [#allocation6], 1 }
 0x206   :  { %273 = vsyncpa [#allocation4], 1 }

</bundles_post_ra>
